<compile_context>
chip_gen: v7x
topology: tpu7x:2x2x1
jax: 0.10.0
libtpu: 0.0.40
codegen_flags: <defaults>
</compile_context>

<pallas_src>
import jax
import jax.numpy as jnp
from jax import lax
from jax.experimental import pallas as pl
from jax.experimental.pallas import tpu as pltpu

BN_EPS = 1e-5
_TILE_TARGET_BYTES = 8 * 1024 * 1024          # per x block (double-buffered)
_VMEM_LIMIT_BYTES = 48 * 1024 * 1024          # fits v5e/v6e/v7x comfortably


def _gate_kernel(x_ref, w1_ref, b1_ref, w2_ref, b2_ref, gate_ref):
    # x_ref: (TM, C*HW) block.  Avg-pool + BN scale are folded into w1_ref.
    x = x_ref[...]

    # fc1 (1x1 conv, no bias) + folded avg-pool/BN scale, bias, ReLU.
    y1 = jnp.dot(x, w1_ref[...], preferred_element_type=jnp.float32)
    y1 = jnp.maximum(y1 + b1_ref[...], 0.0)                        # (TM, h_c)

    # fc2 (1x1 conv + bias) -> log_alpha
    log_alpha = jnp.dot(y1, w2_ref[...], preferred_element_type=jnp.float32)
    log_alpha = log_alpha + b2_ref[...]                            # (TM, o_c)

    # gate = (sigmoid(log_alpha) > 0.5).float()  ==  (log_alpha > 0).float()
    gate_ref[...] = (log_alpha > 0.0).astype(gate_ref.dtype)


def _pick_tm(n, row_bytes, target_bytes=_TILE_TARGET_BYTES):
    """Batch-tile size.  Prefers (a) no HBM-side padding of x, (b) >=2 grid
    steps when the batch allows it (v7x megacore), (c) multiples of 8 rows."""
    budget_rows = max(8, (target_bytes // row_bytes) // 8 * 8)
    if n <= budget_rows:
        # Whole batch fits one block.  Split in two if we cleanly can, so the
        # grid has >=2 parallel steps for the two v7x TensorCores.
        half = (n // 2) // 8 * 8
        if half >= 8 and n % half == 0:
            return half
        return n
    # Largest multiple-of-8 tile within budget that divides N exactly
    # (avoids materializing a padded copy of x in HBM).
    for tm in range(min(budget_rows, n // 8 * 8), 7, -8):
        if n % tm == 0:
            return tm
    return budget_rows  # fallback: wrapper pads the batch tail


def gate_forward(x_nchw, params):
    """Eval-mode forward of Gate.  x_nchw: (N, C, H, W).
    Returns the hard gate of shape (N, o_c, 1, 1) in float32 (PyTorch parity)."""
    n, c, h, w = x_nchw.shape
    hw = h * w
    chw = c * hw
    # No dtype upcast here: stream x in its native dtype (f32 or bf16).
    x2d = x_nchw.reshape(n, chw)

    w1 = params["w1"].astype(jnp.float32)            # (h_c, i_c)
    w2 = params["w2"].astype(jnp.float32)            # (o_c, h_c)
    h_c = w1.shape[0]
    o_c = w2.shape[0]

    # Fold eval-mode BN + avg-pool scale into fc1 weights/bias (wrapper side):
    #   BN(y) = (y - mean) * s + beta,  s = gamma * rsqrt(var + eps)
    #   pooled = sum / (H*W)
    s = params["gamma"].astype(jnp.float32) * lax.rsqrt(
        params["running_var"].astype(jnp.float32) + BN_EPS)            # (h_c,)
    w1_folded = (w1 * s[:, None] / float(hw)).T                        # (i_c, h_c)
    # Fold the spatial sum into the matmul: repeat each channel row HW times
    # so   x2d @ w1_big  ==  sum_{hw}(x) @ w1_folded.
    w1_big = jnp.repeat(w1_folded, hw, axis=0)                         # (C*HW, h_c)
    b1_folded = (params["beta"].astype(jnp.float32)
                 - params["running_mean"].astype(jnp.float32) * s).reshape(1, h_c)
    w2_t = w2.T                                                        # (h_c, o_c)
    b2 = params["b2"].reshape(1, o_c).astype(jnp.float32)

    # Use native-MXU bf16 weights when the activations are bf16.
    if x2d.dtype == jnp.bfloat16:
        w1_big = w1_big.astype(jnp.bfloat16)

    # Batch tiling.
    row_bytes = chw * x2d.dtype.itemsize
    tm = _pick_tm(n, row_bytes)
    if n % tm == 0:
        n_pad = n
    else:
        # Fallback only (no clean divisor): pad the batch tail in HBM.
        n_pad = pl.cdiv(n, tm) * tm
        x2d = jnp.pad(x2d, ((0, n_pad - n), (0, 0)))

    grid = (n_pad // tm,)

    weight_bytes = (w1_big.size * w1_big.dtype.itemsize
                    + (h_c * o_c + h_c + o_c) * 4)
    cost = pl.CostEstimate(
        flops=2 * n_pad * (chw * h_c + h_c * o_c),
        transcendentals=0,
        bytes_accessed=n_pad * row_bytes + weight_bytes + n_pad * o_c * 4,
    )

    gate = pl.pallas_call(
        _gate_kernel,
        out_shape=jax.ShapeDtypeStruct((n_pad, o_c), jnp.float32),
        grid=grid,
        in_specs=[
            # x: one lane-dense (tm, C*HW) block per grid step (pipelined DMA).
            pl.BlockSpec((tm, chw), lambda i: (i, 0)),
            # Small weight / bias tensors stay resident across all grid steps.
            pl.BlockSpec((chw, h_c), lambda i: (0, 0)),
            pl.BlockSpec((1, h_c), lambda i: (0, 0)),
            pl.BlockSpec((h_c, o_c), lambda i: (0, 0)),
            pl.BlockSpec((1, o_c), lambda i: (0, 0)),
        ],
        out_specs=pl.BlockSpec((tm, o_c), lambda i: (i, 0)),
        compiler_params=pltpu.CompilerParams(
            dimension_semantics=("parallel",),
            vmem_limit_bytes=_VMEM_LIMIT_BYTES),
        cost_estimate=cost,
    )(x2d, w1_big, b1_folded, w2_t, b2)

    # Drop any batch padding, match PyTorch output shape (N, o_c, 1, 1).
    return gate[:n].reshape(n, o_c, 1, 1)


def make_params(in_channels, out_channels, hidden_channels, key):
    k1, k2, k3 = jax.random.split(key, 3)
    w1 = jax.random.normal(k1, (hidden_channels, in_channels), jnp.float32) * 0.1
    w2 = jax.random.normal(k2, (out_channels, hidden_channels), jnp.float32) * 0.1
    b2 = jax.random.normal(k3, (out_channels,), jnp.float32) * 0.1
    return {
        "w1": w1,
        "w2": w2,
        "b2": b2,
        "gamma": jnp.ones((hidden_channels,), jnp.float32),
        "beta": jnp.zeros((hidden_channels,), jnp.float32),
        "running_mean": jnp.zeros((hidden_channels,), jnp.float32),
        "running_var": jnp.ones((hidden_channels,), jnp.float32),
    }


def _reference(x_nchw, params):
    """Pure-JAX reference of the eval-mode forward (unfused, unfolded)."""
    pooled = jnp.mean(x_nchw.astype(jnp.float32), axis=(2, 3))     # (N, C)
    y1 = pooled @ params["w1"].T                                   # (N, h_c)
    y1 = (y1 - params["running_mean"]) / jnp.sqrt(params["running_var"] + BN_EPS)
    y1 = y1 * params["gamma"] + params["beta"]
    y1 = jnp.maximum(y1, 0.0)
    log_alpha = y1 @ params["w2"].T + params["b2"]                 # (N, o_c)
    gate = (jax.nn.sigmoid(log_alpha) > 0.5).astype(jnp.float32)
    return gate.reshape(x_nchw.shape[0], -1, 1, 1)


if __name__ == "__main__":
    key = jax.random.PRNGKey(0)
    kx, kp = jax.random.split(key)

    # Small shapes consistent with the module: N=2, in_channels=4, H=W=16,
    # hidden_channels=16 (default), out_channels=8.
    N, IC, H, W = 2, 4, 16, 16
    HC, OC = 16, 8

    x = jax.random.normal(kx, (N, IC, H, W), jnp.float32)
    params = make_params(IC, OC, HC, kp)

    gate = gate_forward(x, params)
    jax.block_until_ready(gate)

    ref = _reference(x, params)
    assert gate.shape == (N, OC, 1, 1)
    assert bool(jnp.all(gate == ref))

    print("KERNEL_OK")
</pallas_src>

<mosaic_0001>
module attributes {stable_mosaic.version = 11 : i64} {
  func.func @_gate_kernel(%arg0: i32, %arg1: memref<2x1024xf32, #tpu.memory_space<vmem>>, %arg2: memref<1024x16xf32, #tpu.memory_space<vmem>>, %arg3: memref<1x16xf32, #tpu.memory_space<vmem>>, %arg4: memref<16x8xf32, #tpu.memory_space<vmem>>, %arg5: memref<1x8xf32, #tpu.memory_space<vmem>>, %arg6: memref<2x8xf32, #tpu.memory_space<vmem>>) attributes {dimension_semantics = [#tpu.dimension_semantics<parallel>], iteration_bounds = array<i64: 1>, scalar_prefetch = 0 : i64, scratch_operands = 0 : i64, tpu.core_type = #tpu.core_type<tc>, window_params = [{transform_indices = @transform_0, window_bounds = array<i64: 2, 1024>}, {pipeline_mode = #tpu.pipeline_mode<synchronous>, transform_indices = @transform_1, window_bounds = array<i64: 1024, 16>}, {pipeline_mode = #tpu.pipeline_mode<synchronous>, transform_indices = @transform_2, window_bounds = array<i64: 1, 16>}, {pipeline_mode = #tpu.pipeline_mode<synchronous>, transform_indices = @transform_3, window_bounds = array<i64: 16, 8>}, {pipeline_mode = #tpu.pipeline_mode<synchronous>, transform_indices = @transform_4, window_bounds = array<i64: 1, 8>}, {transform_indices = @transform_5, window_bounds = array<i64: 2, 8>}]} {
    %c0 = arith.constant 0 : index
    %c0_0 = arith.constant 0 : index
    %0 = vector.load %arg1[%c0, %c0_0] : memref<2x1024xf32, #tpu.memory_space<vmem>>, vector<2x1024xf32>
    %c0_1 = arith.constant 0 : index
    %c0_2 = arith.constant 0 : index
    %1 = vector.load %arg2[%c0_1, %c0_2] : memref<1024x16xf32, #tpu.memory_space<vmem>>, vector<1024x16xf32>
    %cst = arith.constant dense<0.000000e+00> : vector<2x16xf32>
    %2 = tpu.matmul %0, %1, %cst {dimension_numbers = #tpu.dot_dimension_numbers<[1], [0], [0], [1], [0, 0, 1, 1], [], []>} : vector<2x1024xf32>, vector<1024x16xf32>, vector<2x16xf32> -> vector<2x16xf32>
    %c0_3 = arith.constant 0 : index
    %c0_4 = arith.constant 0 : index
    %3 = vector.load %arg3[%c0_3, %c0_4] : memref<1x16xf32, #tpu.memory_space<vmem>>, vector<1x16xf32>
    %4 = vector.broadcast %3 : vector<1x16xf32> to vector<2x16xf32>
    %5 = arith.addf %2, %4 : vector<2x16xf32>
    %cst_5 = arith.constant 0.000000e+00 : f32
    %6 = vector.broadcast %cst_5 : f32 to vector<2x16xf32>
    %7 = arith.maximumf %5, %6 : vector<2x16xf32>
    %c0_6 = arith.constant 0 : index
    %c0_7 = arith.constant 0 : index
    %8 = vector.load %arg4[%c0_6, %c0_7] : memref<16x8xf32, #tpu.memory_space<vmem>>, vector<16x8xf32>
    %cst_8 = arith.constant dense<0.000000e+00> : vector<2x8xf32>
    %9 = tpu.matmul %7, %8, %cst_8 {dimension_numbers = #tpu.dot_dimension_numbers<[1], [0], [0], [1], [0, 0, 1, 1], [], []>} : vector<2x16xf32>, vector<16x8xf32>, vector<2x8xf32> -> vector<2x8xf32>
    %c0_9 = arith.constant 0 : index
    %c0_10 = arith.constant 0 : index
    %10 = vector.load %arg5[%c0_9, %c0_10] : memref<1x8xf32, #tpu.memory_space<vmem>>, vector<1x8xf32>
    %11 = vector.broadcast %10 : vector<1x8xf32> to vector<2x8xf32>
    %12 = arith.addf %9, %11 : vector<2x8xf32>
    %cst_11 = arith.constant 0.000000e+00 : f32
    %13 = vector.broadcast %cst_11 : f32 to vector<2x8xf32>
    %14 = arith.cmpf ogt, %12, %13 : vector<2x8xf32>
    %15 = arith.extui %14 : vector<2x8xi1> to vector<2x8xi32>
    %16 = arith.sitofp %15 : vector<2x8xi32> to vector<2x8xf32>
    %c0_12 = arith.constant 0 : index
    %c0_13 = arith.constant 0 : index
    %17 = vector.load %arg6[%c0_12, %c0_13] : memref<2x8xf32, #tpu.memory_space<vmem>>, vector<2x8xf32>
    tpu.vector_store %arg6[%c0_12, %c0_13], %16 {strides = array<i32>} : memref<2x8xf32, #tpu.memory_space<vmem>>, vector<2x8xf32>,
    return
  }
  func.func @transform_0(%arg0: i32) -> (i32, i32) {
    %c0_i32 = arith.constant 0 : i32
    %c0_i32_0 = arith.constant 0 : i32
    return %arg0, %c0_i32 : i32, i32
  }
  func.func @transform_1(%arg0: i32) -> (i32, i32) {
    %c0_i32 = arith.constant 0 : i32
    %c0_i32_0 = arith.constant 0 : i32
    %c0_i32_1 = arith.constant 0 : i32
    return %c0_i32, %c0_i32_0 : i32, i32
  }
  func.func @transform_2(%arg0: i32) -> (i32, i32) {
    %c0_i32 = arith.constant 0 : i32
    %c0_i32_0 = arith.constant 0 : i32
    %c0_i32_1 = arith.constant 0 : i32
    return %c0_i32, %c0_i32_0 : i32, i32
  }
  func.func @transform_3(%arg0: i32) -> (i32, i32) {
    %c0_i32 = arith.constant 0 : i32
    %c0_i32_0 = arith.constant 0 : i32
    %c0_i32_1 = arith.constant 0 : i32
    return %c0_i32, %c0_i32_0 : i32, i32
  }
  func.func @transform_4(%arg0: i32) -> (i32, i32) {
    %c0_i32 = arith.constant 0 : i32
    %c0_i32_0 = arith.constant 0 : i32
    %c0_i32_1 = arith.constant 0 : i32
    return %c0_i32, %c0_i32_0 : i32, i32
  }
  func.func @transform_5(%arg0: i32) -> (i32, i32) {
    %c0_i32 = arith.constant 0 : i32
    %c0_i32_0 = arith.constant 0 : i32
    return %arg0, %c0_i32 : i32, i32
  }
}

</mosaic_0001>

<bundles_post_ra>
// kernel: tpu_custom_call.1
= control target key start
LH: loop header
LB: loop body
LE: loop exit
PB: predicated region body
PF: predicated region fallthrough
CT: control target
= control target key end

     0   :  { %v901_v47 = vmov 1983009808   ;;  %v164_v49 = vlaneseq  ;;  %s1361_s0 = inlined_call_operand.vmem [shape: f32[2,1024], index: 0, kind: input, shape index: {}]   ;;  %s1362_s1 = inlined_call_operand.vmem [shape: f32[1024,16], index: 1, kind: input, shape index: {}]   ;;  %s1363_s2 = inlined_call_operand.vmem [shape: f32[1,16], index: 2, kind: input, shape index: {}]   ;;  %s1364_s3 = inlined_call_operand.vmem [shape: f32[16,8], index: 3, kind: input, shape index: {}]   ;;  %s1365_s4 = inlined_call_operand.vmem [shape: f32[1,8], index: 4, kind: input, shape index: {}]   ;;  %s1366_s5 = inlined_call_operand.hbm [shape: f32[2,8], index: 5, kind: output, shape index: {}]  }
   0x1   :  { %v39_v0 = vld [vmem:[%s1362_s1 + $0x80] sm:$0xff]  ;;  %v40_v1 = vld [vmem:[%s1362_s1 + $0x88] sm:$0xff]  ;;  %v41_v11 = vld [vmem:[%s1362_s1 + $0x90] sm:$0xff]  ;;  %v162_v48 = vunpack.c.l.s4 %v901_v47 }
   0x2   :  { %v23_v2 = vld [vmem:[%s1362_s1] sm:$0xff]  ;;  %v739_v3 = vpack.c.bf16 %v40_v1, %v39_v0  ;;  %v24_v4 = vld [vmem:[%s1362_s1 + $0x8] sm:$0xff]  ;;  %v42_v13 = vld [vmem:[%s1362_s1 + $0x98] sm:$0xff]  ;;  %v165_v0 = vshrl.u32 %v164_v49, 7 }
   0x3   :  { %v71_v5 = vld [vmem:[%s1362_s1 + $0x180] sm:$0xff]  ;;  %v72_v6 = vld [vmem:[%s1362_s1 + $0x188] sm:$0xff]  ;;  %v741_v7 = vpack.c.bf16 %v24_v4, %v23_v2  ;;  %v25_v14 = vld [vmem:[%s1362_s1 + $0x10] sm:$0xff]  ;;  %v743_v16 = vpack.c.bf16 %v42_v13, %v41_v11  ;;  %v163_v63 = vunpack.c.0.s8 %v162_v48 }
   0x4   :  { %v771_v8 = vpack.c.bf16 %v72_v6, %v71_v5  ;;  %v55_v9 = vld [vmem:[%s1362_s1 + $0x100] sm:$0xff]  ;;  %v56_v10 = vld [vmem:[%s1362_s1 + $0x108] sm:$0xff]  ;;  %740 = vmatprep.subr.bf16.mxu0 %v739_v3  ;;  %v26_v15 = vld [vmem:[%s1362_s1 + $0x18] sm:$0xff] }
   0x5   :  { %v773_v12 = vpack.c.bf16 %v56_v10, %v55_v9  ;;  %742 = vmatpush3.bf16.msra.mxu0 %v741_v7  ;;  %v745_v17 = vpack.c.bf16 %v26_v15, %v25_v14  ;;  %v73_v18 = vld [vmem:[%s1362_s1 + $0x190] sm:$0xff]  ;;  %v74_v19 = vld [vmem:[%s1362_s1 + $0x198] sm:$0xff]  ;;  %v43_v23 = vld [vmem:[%s1362_s1 + $0xa0] sm:$0xff]  ;;  %v1086_v13 = vsub.s32 %v163_v63, %v165_v0 }
   0x6   :  { %772 = vmatprep.subr.bf16.mxu1 %v771_v8  ;;  %v57_v20 = vld [vmem:[%s1362_s1 + $0x110] sm:$0xff]  ;;  %v775_v21 = vpack.c.bf16 %v74_v19, %v73_v18  ;;  %v58_v22 = vld [vmem:[%s1362_s1 + $0x118] sm:$0xff]  ;;  %v44_v24 = vld [vmem:[%s1362_s1 + $0xa8] sm:$0xff]  ;;  %744 = vmatprep.subr.bf16.mxu0 %v743_v16 }
   0x7   :  { %774 = vmatpush3.bf16.msra.mxu1 %v773_v12  ;;  %v777_v25 = vpack.c.bf16 %v58_v22, %v57_v20  ;;  %v747_v26 = vpack.c.bf16 %v44_v24, %v43_v23  ;;  %v27_v27 = vld [vmem:[%s1362_s1 + $0x20] sm:$0xff]  ;;  %v28_v28 = vld [vmem:[%s1362_s1 + $0x28] sm:$0xff]  ;;  %v45_v35 = vld [vmem:[%s1362_s1 + $0xb0] sm:$0xff] }
   0x8   :  { %v75_v29 = vld [vmem:[%s1362_s1 + $0x1a0] sm:$0xff]  ;;  %776 = vmatprep.subr.bf16.mxu1 %v775_v21  ;;  %v76_v30 = vld [vmem:[%s1362_s1 + $0x1a8] sm:$0xff]  ;;  %v749_v33 = vpack.c.bf16 %v28_v28, %v27_v27  ;;  %v46_v36 = vld [vmem:[%s1362_s1 + $0xb8] sm:$0xff] }
   0x9   :  { %v59_v31 = vld [vmem:[%s1362_s1 + $0x120] sm:$0xff]  ;;  %v60_v32 = vld [vmem:[%s1362_s1 + $0x128] sm:$0xff]  ;;  %746 = vmatpush3.bf16.msra.mxu0 %v745_v17  ;;  %v779_v34 = vpack.c.bf16 %v76_v30, %v75_v29  ;;  %v29_v37 = vld [vmem:[%s1362_s1 + $0x30] sm:$0xff]  ;;  %v751_v39 = vpack.c.bf16 %v46_v36, %v45_v35 }
   0xa   :  { %748 = vmatprep.subr.bf16.mxu0 %v747_v26  ;;  %v781_v38 = vpack.c.bf16 %v60_v32, %v59_v31  ;;  %v30_v40 = vld [vmem:[%s1362_s1 + $0x38] sm:$0xff]  ;;  %v77_v41 = vld [vmem:[%s1362_s1 + $0x1b0] sm:$0xff]  ;;  %v47_v46 = vld [vmem:[%s1362_s1 + $0xc0] sm:$0xff] }
   0xb   :  { %778 = vmatpush3.bf16.msra.mxu1 %v777_v25  ;;  %v78_v42 = vld [vmem:[%s1362_s1 + $0x1b8] sm:$0xff]  ;;  %v61_v44 = vld [vmem:[%s1362_s1 + $0x130] sm:$0xff]  ;;  %v48_v50 = vld [vmem:[%s1362_s1 + $0xc8] sm:$0xff]  ;;  %v753_v51 = vpack.c.bf16 %v30_v40, %v29_v37 }
   0xc   :  { %780 = vmatprep.subr.bf16.mxu1 %v779_v34  ;;  %v783_v43 = vpack.c.bf16 %v78_v42, %v77_v41  ;;  %v62_v45 = vld [vmem:[%s1362_s1 + $0x138] sm:$0xff]  ;;  %v79_v52 = vld [vmem:[%s1362_s1 + $0x1c0] sm:$0xff]  ;;  %v80_v53 = vld [vmem:[%s1362_s1 + $0x1c8] sm:$0xff]  ;;  %v755_v55 = vpack.c.bf16 %v48_v50, %v47_v46 }
   0xd   :  { %750 = vmatpush3.bf16.msra.mxu0 %v749_v33  ;;  %v785_v54 = vpack.c.bf16 %v62_v45, %v61_v44  ;;  %v31_v56 = vld [vmem:[%s1362_s1 + $0x40] sm:$0xff]  ;;  %v32_v57 = vld [vmem:[%s1362_s1 + $0x48] sm:$0xff]  ;;  %v787_v59 = vpack.c.bf16 %v80_v53, %v79_v52  ;;  %v49_v61 = vld [vmem:[%s1362_s1 + $0xd0] sm:$0xff] }
   0xe   :  { %752 = vmatprep.subr.bf16.mxu0 %v751_v39  ;;  %v63_v58 = vld [vmem:[%s1362_s1 + $0x140] sm:$0xff]  ;;  %v64_v60 = vld [vmem:[%s1362_s1 + $0x148] sm:$0xff]  ;;  %v50_v62 = vld [vmem:[%s1362_s1 + $0xd8] sm:$0xff]  ;;  %v757_v3 = vpack.c.bf16 %v32_v57, %v31_v56 }
   0xf   :  { %782 = vmatpush3.bf16.msra.mxu1 %v781_v38  ;;  %v81_v1 = vld [vmem:[%s1362_s1 + $0x1d0] sm:$0xff]  ;;  %v82_v2 = vld [vmem:[%s1362_s1 + $0x1d8] sm:$0xff]  ;;  %v789_v4 = vpack.c.bf16 %v64_v60, %v63_v58  ;;  %v759_v5 = vpack.c.bf16 %v50_v62, %v49_v61  ;;  %v51_v11 = vld [vmem:[%s1362_s1 + $0xe0] sm:$0xff] }
  0x10   :  { %784 = vmatprep.subr.bf16.mxu1 %v783_v43  ;;  %v33_v6 = vld [vmem:[%s1362_s1 + $0x50] sm:$0xff]  ;;  %v34_v7 = vld [vmem:[%s1362_s1 + $0x58] sm:$0xff]  ;;  %v791_v9 = vpack.c.bf16 %v82_v2, %v81_v1  ;;  %v52_v12 = vld [vmem:[%s1362_s1 + $0xe8] sm:$0xff] }
  0x11   :  { %754 = vmatpush3.bf16.msra.mxu0 %v753_v51  ;;  %v65_v8 = vld [vmem:[%s1362_s1 + $0x150] sm:$0xff]  ;;  %v66_v10 = vld [vmem:[%s1362_s1 + $0x158] sm:$0xff]  ;;  %v83_v14 = vld [vmem:[%s1362_s1 + $0x1e0] sm:$0xff]  ;;  %v761_v16 = vpack.c.bf16 %v34_v7, %v33_v6  ;;  %v763_v19 = vpack.c.bf16 %v52_v12, %v51_v11 }
  0x12   :  { %756 = vmatprep.subr.bf16.mxu0 %v755_v55  ;;  %v84_v15 = vld [vmem:[%s1362_s1 + $0x1e8] sm:$0xff]  ;;  %v35_v17 = vld [vmem:[%s1362_s1 + $0x60] sm:$0xff]  ;;  %v793_v18 = vpack.c.bf16 %v66_v10, %v65_v8  ;;  %v53_v25 = vld [vmem:[%s1362_s1 + $0xf0] sm:$0xff] }
  0x13   :  { %786 = vmatpush3.bf16.msra.mxu1 %v785_v54  ;;  %v36_v20 = vld [vmem:[%s1362_s1 + $0x68] sm:$0xff]  ;;  %v67_v21 = vld [vmem:[%s1362_s1 + $0x160] sm:$0xff]  ;;  %v795_v23 = vpack.c.bf16 %v84_v15, %v83_v14  ;;  %v54_v26 = vld [vmem:[%s1362_s1 + $0xf8] sm:$0xff] }
  0x14   :  { %788 = vmatprep.subr.bf16.mxu1 %v787_v59  ;;  %v21_v22 = vld [vmem:[%s1361_s0] sm:$0xff]  ;;  %v68_v24 = vld [vmem:[%s1362_s1 + $0x168] sm:$0xff]  ;;  %v85_v29 = vld [vmem:[%s1362_s1 + $0x1f0] sm:$0xff]  ;;  %v765_v31 = vpack.c.bf16 %v36_v20, %v35_v17  ;;  %v767_v35 = vpack.c.bf16 %v54_v26, %v53_v25 }
  0x15   :  { %758 = vmatpush3.bf16.msra.mxu0 %v757_v3  ;;  %v167_v27 = vrot.slane %v21_v22, %v1086_v13  ;;  %v160_v28 = vcombine.high %v21_v22, %v21_v22  ;;  %v86_v30 = vld [vmem:[%s1362_s1 + $0x1f8] sm:$0xff]  ;;  %v797_v34 = vpack.c.bf16 %v68_v24, %v67_v21  ;;  %v37_v36 = vld [vmem:[%s1362_s1 + $0x70] sm:$0xff]  ;;  %v103_v41 = vld [vmem:[%s1362_s1 + $0x280] sm:$0xff] }
  0x16   :  { %760 = vmatprep.subr.bf16.mxu0 %v759_v5  ;;  %v38_v37 = vld [vmem:[%s1362_s1 + $0x78] sm:$0xff]  ;;  %v69_v38 = vld [vmem:[%s1362_s1 + $0x170] sm:$0xff]  ;;  %v799_v39 = vpack.c.bf16 %v86_v30, %v85_v29  ;;  %v104_v42 = vld [vmem:[%s1362_s1 + $0x288] sm:$0xff] }
  0x17   :  { %790 = vmatpush3.bf16.msra.mxu1 %v789_v4  ;;  %v175_v32 = vcombine.high %v167_v27, %v167_v27  ;;  %v174_v33 = vrot.slane %v160_v28, %v1086_v13  ;;  %v70_v40 = vld [vmem:[%s1362_s1 + $0x178] sm:$0xff]  ;;  %v135_v44 = vld [vmem:[%s1362_s1 + $0x380] sm:$0xff]  ;;  %v136_v45 = vld [vmem:[%s1362_s1 + $0x388] sm:$0xff]  ;;  %v769_v46 = vpack.c.bf16 %v38_v37, %v37_v36  ;;  %v803_v48 = vpack.c.bf16 %v104_v42, %v103_v41 }
  0x18   :  { %792 = vmatprep.subr.bf16.mxu1 %v791_v9  ;;  %v801_v47 = vpack.c.bf16 %v70_v40, %v69_v38  ;;  %v87_v49 = vld [vmem:[%s1362_s1 + $0x200] sm:$0xff]  ;;  %v88_v50 = vld [vmem:[%s1362_s1 + $0x208] sm:$0xff]  ;;  %v835_v52 = vpack.c.bf16 %v136_v45, %v135_v44  ;;  %v105_v54 = vld [vmem:[%s1362_s1 + $0x290] sm:$0xff] }
  0x19   :  { %762 = vmatpush3.bf16.msra.mxu0 %v761_v16  ;;  %266 = vmatprep.mubr.f32.mxu0 %v175_v32  ;;  %v176_v43 = vcombine.high %v174_v33, %v174_v33  ;;  %v119_v51 = vld [vmem:[%s1362_s1 + $0x300] sm:$0xff]  ;;  %v120_v53 = vld [vmem:[%s1362_s1 + $0x308] sm:$0xff]  ;;  %v106_v55 = vld [vmem:[%s1362_s1 + $0x298] sm:$0xff]  ;;  %v805_v58 = vpack.c.bf16 %v88_v50, %v87_v49 }
  0x1a   :  { %764 = vmatprep.subr.bf16.mxu0 %v763_v19  ;;  %v137_v56 = vld [vmem:[%s1362_s1 + $0x390] sm:$0xff]  ;;  %v138_v57 = vld [vmem:[%s1362_s1 + $0x398] sm:$0xff]  ;;  %v837_v59 = vpack.c.bf16 %v120_v53, %v119_v51  ;;  %v807_v60 = vpack.c.bf16 %v106_v55, %v105_v54  ;;  %v107_v2 = vld [vmem:[%s1362_s1 + $0x2a0] sm:$0xff] }
  0x1b   :  { %794 = vmatpush3.bf16.msra.mxu1 %v793_v18  ;;  %336 = vmatprep.mubr.f32.mxu1 %v176_v43  ;;  %v89_v61 = vld [vmem:[%s1362_s1 + $0x210] sm:$0xff]  ;;  %v90_v62 = vld [vmem:[%s1362_s1 + $0x218] sm:$0xff]  ;;  %v839_v0 = vpack.c.bf16 %v138_v57, %v137_v56  ;;  %v108_v3 = vld [vmem:[%s1362_s1 + $0x2a8] sm:$0xff] }
  0x1c   :  { %796 = vmatprep.subr.bf16.mxu1 %v795_v23  ;;  %v121_v63 = vld [vmem:[%s1362_s1 + $0x310] sm:$0xff]  ;;  %v122_v1 = vld [vmem:[%s1362_s1 + $0x318] sm:$0xff]  ;;  %v139_v4 = vld [vmem:[%s1362_s1 + $0x3a0] sm:$0xff]  ;;  %v809_v6 = vpack.c.bf16 %v90_v62, %v89_v61  ;;  %v811_v8 = vpack.c.bf16 %v108_v3, %v107_v2 }
  0x1d   :  { %766 = vmatpush3.bf16.msra.mxu0 %v765_v31  ;;  %v140_v5 = vld [vmem:[%s1362_s1 + $0x3a8] sm:$0xff]  ;;  %v841_v7 = vpack.c.bf16 %v122_v1, %v121_v63  ;;  %v91_v9 = vld [vmem:[%s1362_s1 + $0x220] sm:$0xff]  ;;  %v109_v15 = vld [vmem:[%s1362_s1 + $0x2b0] sm:$0xff] }
  0x1e   :  { %768 = vmatprep.subr.bf16.mxu0 %v767_v35  ;;  %v92_v10 = vld [vmem:[%s1362_s1 + $0x228] sm:$0xff]  ;;  %v123_v11 = vld [vmem:[%s1362_s1 + $0x320] sm:$0xff]  ;;  %v843_v12 = vpack.c.bf16 %v140_v5, %v139_v4  ;;  %v110_v16 = vld [vmem:[%s1362_s1 + $0x2b8] sm:$0xff] }
  0x1f   :  { %798 = vmatpush3.bf16.msra.mxu1 %v797_v34  ;;  %v124_v14 = vld [vmem:[%s1362_s1 + $0x328] sm:$0xff]  ;;  %v141_v17 = vld [vmem:[%s1362_s1 + $0x3b0] sm:$0xff]  ;;  %v142_v18 = vld [vmem:[%s1362_s1 + $0x3b8] sm:$0xff]  ;;  %v813_v19 = vpack.c.bf16 %v92_v10, %v91_v9  ;;  %v815_v22 = vpack.c.bf16 %v110_v16, %v109_v15 }
  0x20   :  { %800 = vmatprep.subr.bf16.mxu1 %v799_v39  ;;  %v93_v20 = vld [vmem:[%s1362_s1 + $0x230] sm:$0xff]  ;;  %v845_v21 = vpack.c.bf16 %v124_v14, %v123_v11  ;;  %v94_v23 = vld [vmem:[%s1362_s1 + $0x238] sm:$0xff]  ;;  %v847_v26 = vpack.c.bf16 %v142_v18, %v141_v17  ;;  %v112_v28 = vld [vmem:[%s1362_s1 + $0x2c8] sm:$0xff] }
  0x21   :  { %770 = vmatpush3.bf16.msra.mxu0 %v769_v46  ;;  %v125_v24 = vld [vmem:[%s1362_s1 + $0x330] sm:$0xff]  ;;  %v126_v25 = vld [vmem:[%s1362_s1 + $0x338] sm:$0xff]  ;;  %v143_v29 = vld [vmem:[%s1362_s1 + $0x3c0] sm:$0xff] }
  0x22   :  { %804 = vmatprep.subr.bf16.mxu0 %v803_v48  ;;  %v144_v30 = vld [vmem:[%s1362_s1 + $0x3c8] sm:$0xff] }
  0x23   :  { %802 = vmatpush3.bf16.msra.mxu1 %v801_v47  ;;  %v22_v31 = vld [vmem:[%s1361_s0 + $0x8] sm:$0xff] }
  0x24   :  { %836 = vmatprep.subr.bf16.mxu1 %v835_v52  ;;  %267 = vmatmul.mubr.f32.vlgmr.msra.gmra.mrb[0].mxu0 %v167_v27  ;;  %v111_v27 = vld [vmem:[%s1362_s1 + $0x2c0] sm:$0xff] }
  0x25   :  { %806 = vmatpush3.bf16.msra.mxu0 %v805_v58 }
  0x26   :  { %337 = vmatmul.mubr.f32.vlgmr.msra.gmra.mrb[0].mxu1 %v174_v33  ;;  %808 = vmatprep.subr.bf16.mxu0 %v807_v60 }
  0x27   :  { %838 = vmatpush3.bf16.msra.mxu1 %v837_v59 }
  0x28   :  { %840 = vmatprep.subr.bf16.mxu1 %v839_v0 }
  0x29   :  { %810 = vmatpush3.bf16.msra.mxu0 %v809_v6 }
  0x2a   :  { %812 = vmatprep.subr.bf16.mxu0 %v811_v8 }
  0x2b   :  { %842 = vmatpush3.bf16.msra.mxu1 %v841_v7 }
  0x2c   :  { %844 = vmatprep.subr.bf16.mxu1 %v843_v12 }
  0x2d   :  { %10 = vsyncpa [#allocation3], 0  ;;  %814 = vmatpush3.bf16.msra.mxu0 %v813_v19  ;;  %v817_v32 = vpack.c.bf16 %v94_v23, %v93_v20  ;;  %v1247_v33 = vrot.slane %v22_v31, %v1086_v13  ;;  %v177_v34 = vcombine.high %v22_v31, %v22_v31  ;;  %v849_v35 = vpack.c.bf16 %v126_v25, %v125_v24  ;;  %v95_v37 = vld [vmem:[%s1362_s1 + $0x240] sm:$0xff]  ;;  %v96_v38 = vld [vmem:[%s1362_s1 + $0x248] sm:$0xff]  ;;  %s905_s30 = smov [#allocation2]  }
  0x2e   :  { %816 = vmatprep.subr.bf16.mxu0 %v815_v22  ;;  %v819_v36 = vpack.c.bf16 %v112_v28, %v111_v27  ;;  %v127_v39 = vld [vmem:[%s1362_s1 + $0x340] sm:$0xff]  ;;  %v851_v40 = vpack.c.bf16 %v144_v30, %v143_v29  ;;  %v128_v41 = vld [vmem:[%s1362_s1 + $0x348] sm:$0xff]  ;;  %v113_v42 = vld [vmem:[%s1362_s1 + $0x2d0] sm:$0xff]  ;;  %v821_v48 = vpack.c.bf16 %v96_v38, %v95_v37  ;;  %v902_v22 = vmov 0.0|0.0   ;;  %s577_s6 = sshll.u32 %s905_s30, 4  ;;  %s578_s6 = int_to_ptr.vmem [resolvable:$true] %s577_s6 }
  0x2f   :  { %846 = vmatpush3.bf16.msra.mxu1 %v845_v21  ;;  %v114_v43 = vld [vmem:[%s1362_s1 + $0x2d8] sm:$0xff]  ;;  %v192_v44 = vcombine.high %v1247_v33, %v1247_v33  ;;  %v191_v45 = vrot.slane %v177_v34, %v1086_v13  ;;  %v145_v46 = vld [vmem:[%s1362_s1 + $0x3d0] sm:$0xff]  ;;  %v853_v50 = vpack.c.bf16 %v128_v41, %v127_v39  ;;  %v115_v56 = vld [vmem:[%s1362_s1 + $0x2e0] sm:$0xff]  ;;  %vm903_vm0 = vmmov 0   ;;  %s877_s7 = scalar_lea.vmem %s578_s6, 32  ;;  %p882_p1 = scmp.lt.s32.totalorder %s578_s6, %s578_s6 }
  0x30   :  { %848 = vmatprep.subr.bf16.mxu1 %v847_v26  ;;  %v146_v47 = vld [vmem:[%s1362_s1 + $0x3d8] sm:$0xff]  ;;  %v823_v51 = vpack.c.bf16 %v114_v43, %v113_v42  ;;  %v97_v13 = vld [vmem:[%s1362_s1 + $0x250] sm:$0xff]  ;;  %v116_v57 = vld [vmem:[%s1362_s1 + $0x2e8] sm:$0xff]  ;;  %v904_v23 = vmov 0.0   ;;  %vm492_vm1 = vcmask 130048   ;;  %vm569_vm2 = vcmask 58368   ;;  %p878_p0 = scmp.ne.s32.totalorder %s578_s6, %s877_s7  ;;  %p883_p2 = scmp.lt.s32.totalorder %s877_s7, %s877_s7 }
  0x31   :  { %818 = vmatpush3.bf16.msra.mxu0 %v817_v32  ;;  %406 = vmatprep.mubr.f32.mxu0 %v192_v44  ;;  %v193_v49 = vcombine.high %v191_v45, %v191_v45  ;;  %v98_v52 = vld [vmem:[%s1362_s1 + $0x258] sm:$0xff]  ;;  %v129_v53 = vld [vmem:[%s1362_s1 + $0x350] sm:$0xff]  ;;  %v855_v54 = vpack.c.bf16 %v146_v47, %v145_v46  ;;  %v147_v58 = vld [vmem:[%s1362_s1 + $0x3e0] sm:$0xff]  ;;  %v827_v62 = vpack.c.bf16 %v116_v57, %v115_v56 }
  0x32   :  { %820 = vmatprep.subr.bf16.mxu0 %v819_v36  ;;  %v130_v55 = vld [vmem:[%s1362_s1 + $0x358] sm:$0xff]  ;;  %v148_v59 = vld [vmem:[%s1362_s1 + $0x3e8] sm:$0xff]  ;;  %v825_v60 = vpack.c.bf16 %v98_v52, %v97_v13  ;;  %v99_v63 = vld [vmem:[%s1362_s1 + $0x260] sm:$0xff]  ;;  %p884_p3 = por %p883_p2, %p882_p1 }
  0x33   :  { %850 = vmatpush3.bf16.msra.mxu1 %v849_v35  ;;  %476 = vmatprep.mubr.f32.mxu1 %v193_v49  ;;  %v857_v61 = vpack.c.bf16 %v130_v55, %v129_v53  ;;  %v100_v0 = vld [vmem:[%s1362_s1 + $0x268] sm:$0xff]  ;;  %v131_v1 = vld [vmem:[%s1362_s1 + $0x360] sm:$0xff]  ;;  %v859_v2 = vpack.c.bf16 %v148_v59, %v147_v58  ;;  %v117_v4 = vld [vmem:[%s1362_s1 + $0x2f0] sm:$0xff] }
  0x34   :  { %852 = vmatprep.subr.bf16.mxu1 %v851_v40  ;;  %v132_v3 = vld [vmem:[%s1362_s1 + $0x368] sm:$0xff]  ;;  %v118_v5 = vld [vmem:[%s1362_s1 + $0x2f8] sm:$0xff]  ;;  %v149_v6 = vld [vmem:[%s1362_s1 + $0x3f0] sm:$0xff]  ;;  %v829_v8 = vpack.c.bf16 %v100_v0, %v99_v63  ;;  %p885_p4 = pnand %p884_p3, %p878_p0 }
  0x35   :  { %822 = vmatpush3.bf16.msra.mxu0 %v821_v48  ;;  %v150_v7 = vld [vmem:[%s1362_s1 + $0x3f8] sm:$0xff]  ;;  %v861_v9 = vpack.c.bf16 %v132_v3, %v131_v1  ;;  %v831_v10 = vpack.c.bf16 %v118_v5, %v117_v4  ;;  %v101_v11 = vld [vmem:[%s1362_s1 + $0x270] sm:$0xff]  ;;  %v483_v19 = vld [vmem:[%s1364_s3] sm:$0xff] }
  0x36   :  { %824 = vmatprep.subr.bf16.mxu0 %v823_v51  ;;  %v102_v12 = vld [vmem:[%s1362_s1 + $0x278] sm:$0xff]  ;;  %v863_v14 = vpack.c.bf16 %v150_v7, %v149_v6  ;;  %v133_v15 = vld [vmem:[%s1362_s1 + $0x370] sm:$0xff]  ;;  %v484_v20 = vld [vmem:[%s1364_s3 + $0x8] sm:$0xff] }
  0x37   :  { %854 = vmatpush3.bf16.msra.mxu1 %v853_v50  ;;  %v134_v16 = vld [vmem:[%s1362_s1 + $0x378] sm:$0xff]  ;;  %v833_v17 = vpack.c.bf16 %v102_v12, %v101_v11  ;;  %v868_v21 = vpack.c.bf16 %v484_v20, %v483_v19  ;;  %v585_v25 = vld [vmem:[%s1363_s2] ss:$0 sm:$0xff] }
  0x38   :  { %856 = vmatprep.subr.bf16.mxu1 %v855_v54  ;;  %v865_v18 = vpack.c.bf16 %v134_v16, %v133_v15  ;;  %v586_v42 = vld [vmem:[%s1365_s4] ss:$0 sm:$0xff] }
  0x39   :  { %826 = vmatpush3.bf16.msra.mxu0 %v825_v60 }
  0x3a   :  { %828 = vmatprep.subr.bf16.mxu0 %v827_v62 }
  0x3b   :  { %858 = vmatpush3.bf16.msra.mxu1 %v857_v61 }
  0x3c   :  { %860 = vmatprep.subr.bf16.mxu1 %v859_v2 }
  0x3d   :  { %830 = vmatpush3.bf16.msra.mxu0 %v829_v8 }
  0x3e   :  { %832 = vmatprep.subr.bf16.mxu0 %v831_v10 }
  0x3f   :  { %862 = vmatpush3.bf16.msra.mxu1 %v861_v9 }
  0x40   :  { %864 = vmatprep.subr.bf16.mxu1 %v863_v14 }
  0x41   :  { %834 = vmatpush3.bf16.msra.mxu0 %v833_v17 }
  0x42   :  { %867 = vmatprep.subr.bf16.mxu0 %v902_v22 }
  0x43   :  { %866 = vmatpush3.bf16.msra.mxu1 %v865_v18 }
  0x44   :  { %407 = vmatmul.mubr.f32.vlgmr.msra.gmra.mrb[2].mxu0 %v1247_v33 }
  0x45   :  { %869 = vmatpush3.bf16.msra.mxu0 %v868_v21  ;;  %736 = vmatprep.mubr.msk.f32.mxu0 %vm903_vm0, %v904_v23 }
  0x46   :  { %477 = vmatmul.mubr.f32.vlgmr.msra.gmra.mrb[2].mxu1 %v191_v45 }
  0xf7   :  { %v621_v24 = vpop.f32.mrb[0].mxu0 }
  0xf8   :  { %v622_v26 = vpop.f32.mrb[1].mxu0 }
  0xf9   :  { %v656_v27 = vpop.f32.mrb[0].mxu1  ;;  %v623_v28 = vadd.f32 %v622_v26, %v621_v24 }
  0xfa   :  { %v657_v29 = vpop.f32.mrb[1].mxu1 }
  0xfb   :  { %v658_v30 = vadd.f32 %v657_v29, %v656_v27  ;;  %v269_v31 = vadd.f32 %v623_v28, %v585_v25 }
  0xfd   :  { %v339_v32 = vadd.f32 %v658_v30, %v269_v31 }
 0x117   :  { %v691_v33 = vpop.f32.mrb[2].mxu0 }
 0x118   :  { %v692_v34 = vpop.f32.mrb[3].mxu0 }
 0x119   :  { %v726_v35 = vpop.f32.mrb[2].mxu1  ;;  %v693_v36 = vadd.f32 %v692_v34, %v691_v33 }
 0x11a   :  { %v727_v37 = vpop.f32.mrb[3].mxu1 }
 0x11b   :  { %v728_v38 = vadd.f32 %v727_v37, %v726_v35  ;;  %v409_v39 = vadd.f32 %v693_v36, %v339_v32 }
 0x11d   :  { %v479_v40 = vadd.f32 %v728_v38, %v409_v39 }
 0x11f   :  { %v482_v41 = vmax.f32 %v479_v40, 0.0 }
 0x121   :  { %737 = vmatmul.mubr.msk.f32.vlgmr.msra.gmra.mrb[4].mxu0 %vm492_vm1, %v482_v41 }
 0x1f4   :  { %v562_v43 = vpop.f32.mrb[4].mxu0 }
 0x1f5   :  { %v563_v44 = vadd.f32 %v586_v42, %v562_v43  ;;  %v738_v45 = vpop.f32.mrb[5].mxu0 }
 0x1f7   :  { %vm566_vm3 = vcmp.gt.f32.partialorder %v563_v44, 0.0 }
 0x1f8   :  { %v588_v46 = vsel %vm566_vm3, 1.0, %v904_v23 }
 0x1f9   :  { %570 = vst.msk [vmem:[#allocation2] sm:$0x3] %vm569_vm2, %v588_v46 }
 0x1fa   :  { %888 = shalt.err (!%p885_p4)
}
 0x1fb   :  { %s889_s4 = scalar_lea.hbm %s1366_s5, 32 }
 0x1fc   :  { %p890_p5 = scmp.ne.s32.totalorder %s1366_s5, %s889_s4  ;;  %p893_p6 = scmp.lt.u32.totalorder %s889_s4, %s1366_s5 }
 0x1fe   :  { %p895_p7 = pnand %p893_p6, %p890_p5 }
 0x200   :  { %898 = shalt.err (!%p895_p7)
}
 0x201   :  { %580 = dma.vmem_to_hbm [thread:$0]  %s578_s6, 32, %s1366_s5, [#allocation3]  }
 0x202   :  { %899 = dma.done.wait [#allocation3], 32  }
 0x203   :  { %900 = vsyncadd [#allocation3], 4294967264 }
 0x204   :  { %584 = vsyncpa [#allocation3], 1 }

</bundles_post_ra>
